<compile_context>
chip_gen: v6e
topology: v6e:2x2x1
jax: 0.10.0
libtpu: 0.0.40
codegen_flags: <defaults>
</compile_context>

<pallas_src>
import functools

import jax
import jax.numpy as jnp
import numpy as np
from jax.experimental import pallas as pl
from jax.experimental.pallas import tpu as pltpu

PAD = 128       # lane padding for every matmul K/N dimension
SUBLANE = 8     # f32 sublane count (batch-row padding)


# ------------------------------ fused Pallas kernel -------------------------

def _fused_tcn_kernel(x_ref, w_ref, b_ref, o_ref, *, n_blocks, has_down):
    """Entire TCN forward, fully VMEM resident.

    x_ref : (Bp, PAD)             f32  padded activation (torch c*L+l flatten)
    w_ref : (n_layers, PAD, PAD)  bf16 stacked, zero-padded layer matrices
    b_ref : (n_layers, PAD)       f32  stacked, zero-padded biases
    o_ref : (Bp, PAD)             f32  lane-dense output slab
    """
    h = x_ref[...]                                             # f32 (Bp, PAD)
    idx = 0

    def dense(a, i):
        # MXU: bf16 x bf16 -> f32 accumulation; bias add in f32 on the VPU.
        return (jnp.dot(a.astype(jnp.bfloat16), w_ref[i],
                        preferred_element_type=jnp.float32)
                + b_ref[i:i + 1, :])

    for blk in range(n_blocks):
        # conv1 -> chomp -> relu        (dropout is identity in eval mode)
        h1 = jnp.maximum(dense(h, idx), 0.0); idx += 1
        # conv2 -> chomp -> relu
        h2 = jnp.maximum(dense(h1, idx), 0.0); idx += 1
        # residual branch (1x1 downsample conv when channel counts differ)
        if has_down[blk]:
            res = dense(h, idx); idx += 1
        else:
            res = h
        h = jnp.maximum(h2 + res, 0.0)

    # linear1 -> relu -> linear2
    hh = jnp.maximum(dense(h, idx), 0.0); idx += 1
    out = dense(hh, idx)
    # TODO(synk): nn.Softmax is declared in __init__ but never used in forward; omitted.
    o_ref[...] = out.astype(o_ref.dtype)


def tcn_forward(x_bcl, fused):
    """Forward pass (eval mode) matching the PyTorch TCN module.

    x_bcl: (B, input_size, length_MC)  (NCW, like torch). Returns float32 (B, out);
    the module's trailing .double() cast is done on the host by the caller.
    """
    B, c0, L = x_bcl.shape
    f_in = c0 * L
    Bp = max(SUBLANE, ((B + SUBLANE - 1) // SUBLANE) * SUBLANE)
    # torch's flatten layout c*L+l -> no transpose; pad rows/lanes with zeros.
    x_flat = x_bcl.reshape(B, f_in).astype(jnp.float32)
    x_pad = jnp.zeros((Bp, PAD), jnp.float32).at[:B, :f_in].set(x_flat)

    w, b = fused["weights"], fused["biases"]
    n_layers = int(w.shape[0])
    cost = pl.CostEstimate(
        flops=2 * Bp * PAD * PAD * n_layers,
        transcendentals=0,
        bytes_accessed=int(x_pad.size * 4 + w.size * 2 + b.size * 4 + Bp * PAD * 4),
    )
    vmem_spec = pl.BlockSpec(memory_space=pltpu.MemorySpace.VMEM)
    out_pad = pl.pallas_call(
        functools.partial(_fused_tcn_kernel,
                          n_blocks=fused["n_blocks"],
                          has_down=fused["has_down"]),
        out_shape=jax.ShapeDtypeStruct((Bp, PAD), jnp.float32),
        in_specs=[vmem_spec, vmem_spec, vmem_spec],
        out_specs=vmem_spec,
        cost_estimate=cost,
    )(x_pad, w, b)
    return out_pad[:B, :fused["out_dim"]]


# --------------------- host-side (one-time) weight preparation ---------------

def _conv_toeplitz(w, dilation, L):
    """PyTorch Conv1d weight (Cout, Cin, K) for a causal ('chomped') dilated conv
    over a fixed length-L sequence, as a dense (Cin*L, Cout*L) matrix acting on
    the torch-flatten activation (feature index = c*L + l)."""
    w = np.asarray(w, dtype=np.float32)
    cout, cin, k = w.shape
    m = np.zeros((cin, L, cout, L), dtype=np.float32)
    for j in range(k):
        s = (k - 1 - j) * dilation
        for l in range(L):
            lp = l - s
            if lp >= 0:
                m[:, lp, :, l] += w[:, :, j].T          # (cin, cout)
    return m.reshape(cin * L, cout * L)


def _pad2(m):
    m = np.asarray(m, dtype=np.float32)
    assert m.shape[0] <= PAD and m.shape[1] <= PAD, "feature dim exceeds PAD"
    out = np.zeros((PAD, PAD), dtype=np.float32)
    out[: m.shape[0], : m.shape[1]] = m
    return out


def _pad1(v):
    v = np.asarray(v, dtype=np.float32)
    assert v.shape[0] <= PAD, "feature dim exceeds PAD"
    out = np.zeros((PAD,), dtype=np.float32)
    out[: v.shape[0]] = v
    return out


def prepare_fused_params(params, length_MC):
    """Fold all weights into the stacked, padded matmul form the fused kernel eats."""
    L = length_MC
    weights, biases, has_down = [], [], []
    for i, blk in enumerate(params["blocks"]):
        d = 2 ** i
        weights.append(_pad2(_conv_toeplitz(blk["conv1_w"], d, L)))
        biases.append(_pad1(np.repeat(np.asarray(blk["conv1_b"], np.float32), L)))
        weights.append(_pad2(_conv_toeplitz(blk["conv2_w"], d, L)))
        biases.append(_pad1(np.repeat(np.asarray(blk["conv2_b"], np.float32), L)))
        if blk["down_w"] is not None:
            weights.append(_pad2(_conv_toeplitz(blk["down_w"], 1, L)))
            biases.append(_pad1(np.repeat(np.asarray(blk["down_b"], np.float32), L)))
            has_down.append(True)
        else:
            has_down.append(False)

    # torch flattens (B, C, L) -> feature index c*L + l, which is exactly our
    # activation layout, so lin1 needs only a transpose (no row permutation).
    w1 = np.asarray(params["lin1_w"], dtype=np.float32)          # (64, C*L)
    w2 = np.asarray(params["lin2_w"], dtype=np.float32)          # (out, 64)
    weights.append(_pad2(w1.T))
    biases.append(_pad1(np.asarray(params["lin1_b"], np.float32)))
    weights.append(_pad2(w2.T))
    biases.append(_pad1(np.asarray(params["lin2_b"], np.float32)))

    return {
        "weights": jnp.asarray(np.stack(weights), dtype=jnp.bfloat16),  # (n,128,128)
        "biases": jnp.asarray(np.stack(biases), dtype=jnp.float32),     # (n,128)
        "has_down": tuple(has_down),
        "n_blocks": len(params["blocks"]),
        "out_dim": int(w2.shape[0]),
    }


# ----------------------------- parameter init --------------------------------

def init_params(key, input_size, output_size, num_channels, kernel_size, length_MC):
    keys = iter(jax.random.split(key, 64))

    def normal(shape, scale):
        return scale * jax.random.normal(next(keys), shape, dtype=jnp.float32)

    blocks = []
    in_ch = input_size
    for out_ch in num_channels:
        blk = {
            "conv1_w": normal((out_ch, in_ch, kernel_size), 0.01),
            "conv1_b": normal((out_ch,), 0.01),
            "conv2_w": normal((out_ch, out_ch, kernel_size), 0.01),
            "conv2_b": normal((out_ch,), 0.01),
        }
        if in_ch != out_ch:
            blk["down_w"] = normal((out_ch, in_ch, 1), 0.01)
            blk["down_b"] = normal((out_ch,), 0.01)
        else:
            blk["down_w"] = None
            blk["down_b"] = None
        blocks.append(blk)
        in_ch = out_ch

    feat = num_channels[-1] * length_MC
    return {
        "blocks": blocks,
        "lin1_w": normal((64, feat), 0.1),
        "lin1_b": normal((64,), 0.1),
        "lin2_w": normal((output_size, 64), 0.1),
        "lin2_b": normal((output_size,), 0.1),
    }


# ------------------------- pure-JAX reference (check) -------------------------

def _conv1d_causal_ref(x_bcl, w, b, d):
    k = w.shape[-1]
    pad = (k - 1) * d
    y = jax.lax.conv_general_dilated(
        x_bcl, w, window_strides=(1,), padding=[(pad, 0)], rhs_dilation=(d,),
        dimension_numbers=("NCH", "OIH", "NCH"),
        precision=jax.lax.Precision.HIGHEST)
    return y + b[None, :, None]


def tcn_ref(x_bcl, params):
    x = x_bcl
    for i, blk in enumerate(params["blocks"]):
        d = 2 ** i
        h = jax.nn.relu(_conv1d_causal_ref(x, blk["conv1_w"], blk["conv1_b"], d))
        h = jax.nn.relu(_conv1d_causal_ref(h, blk["conv2_w"], blk["conv2_b"], d))
        res = x if blk["down_w"] is None else _conv1d_causal_ref(x, blk["down_w"], blk["down_b"], 1)
        x = jax.nn.relu(h + res)
    B, C, L = x.shape
    flat = x.reshape(B, C * L)
    h = jax.nn.relu(flat @ params["lin1_w"].T + params["lin1_b"])
    return h @ params["lin2_w"].T + params["lin2_b"]        # f32 on device


# ----------------------------------- main ------------------------------------

if __name__ == "__main__":
    batch = 2
    input_size = 4
    output_size = 3
    num_channels = [8, 8]
    kernel_size = 2
    length_MC = 8          # TCN.linear1 requires the sequence length to equal length_MC

    root = jax.random.PRNGKey(0)
    kx, kp = jax.random.split(root)
    x = jax.random.normal(kx, (batch, input_size, length_MC), dtype=jnp.float32)
    params = init_params(kp, input_size, output_size, num_channels, kernel_size, length_MC)
    fused = prepare_fused_params(params, length_MC)

    fwd = jax.jit(lambda xx: tcn_forward(xx, fused))
    out = jax.block_until_ready(fwd(x))
    assert out.shape == (batch, output_size) and out.dtype == jnp.float32

    # The PyTorch module ends with .double(); TPUs have no native f64, so the cast
    # is performed on the host after device execution.
    out64 = np.asarray(out, dtype=np.float64)
    assert out64.dtype == np.float64

    ref64 = np.asarray(tcn_ref(x, params), dtype=np.float64)
    np.testing.assert_allclose(out64, ref64, rtol=5e-2, atol=5e-3)
    print("KERNEL_OK")
</pallas_src>

<mosaic_0001>
module attributes {stable_mosaic.version = 11 : i64} {
  func.func @_fused_tcn_kernel(%arg0: memref<8x128xf32, #tpu.memory_space<vmem>>, %arg1: memref<7x128x128xbf16, #tpu.memory_space<vmem>>, %arg2: memref<7x128xf32, #tpu.memory_space<vmem>>, %arg3: memref<8x128xf32, #tpu.memory_space<vmem>>) attributes {dimension_semantics = [], scalar_prefetch = 0 : i64, scratch_operands = 0 : i64, tpu.core_type = #tpu.core_type<tc>} {
    %c0 = arith.constant 0 : index
    %c0_0 = arith.constant 0 : index
    %0 = vector.load %arg0[%c0, %c0_0] : memref<8x128xf32, #tpu.memory_space<vmem>>, vector<8x128xf32>
    %1 = arith.truncf %0 : vector<8x128xf32> to vector<8x128xbf16>
    %c0_1 = arith.constant 0 : index
    %c0_2 = arith.constant 0 : index
    %c0_3 = arith.constant 0 : index
    %2 = vector.load %arg1[%c0_1, %c0_2, %c0_3] : memref<7x128x128xbf16, #tpu.memory_space<vmem>>, vector<1x128x128xbf16>
    %3 = vector.shape_cast %2 : vector<1x128x128xbf16> to vector<128x128xbf16>
    %cst = arith.constant dense<0.000000e+00> : vector<8x128xf32>
    %4 = tpu.matmul %1, %3, %cst {dimension_numbers = #tpu.dot_dimension_numbers<[1], [0], [0], [1], [0, 0, 1, 1], [], []>} : vector<8x128xbf16>, vector<128x128xbf16>, vector<8x128xf32> -> vector<8x128xf32>
    %c0_4 = arith.constant 0 : index
    %c0_5 = arith.constant 0 : index
    %5 = vector.load %arg2[%c0_4, %c0_5] : memref<7x128xf32, #tpu.memory_space<vmem>>, vector<1x128xf32>
    %6 = vector.broadcast %5 : vector<1x128xf32> to vector<8x128xf32>
    %7 = arith.addf %4, %6 : vector<8x128xf32>
    %cst_6 = arith.constant 0.000000e+00 : f32
    %8 = vector.broadcast %cst_6 : f32 to vector<8x128xf32>
    %9 = arith.maximumf %7, %8 : vector<8x128xf32>
    %10 = arith.truncf %9 : vector<8x128xf32> to vector<8x128xbf16>
    %c1 = arith.constant 1 : index
    %c0_7 = arith.constant 0 : index
    %c0_8 = arith.constant 0 : index
    %11 = vector.load %arg1[%c1, %c0_7, %c0_8] : memref<7x128x128xbf16, #tpu.memory_space<vmem>>, vector<1x128x128xbf16>
    %12 = vector.shape_cast %11 : vector<1x128x128xbf16> to vector<128x128xbf16>
    %cst_9 = arith.constant dense<0.000000e+00> : vector<8x128xf32>
    %13 = tpu.matmul %10, %12, %cst_9 {dimension_numbers = #tpu.dot_dimension_numbers<[1], [0], [0], [1], [0, 0, 1, 1], [], []>} : vector<8x128xbf16>, vector<128x128xbf16>, vector<8x128xf32> -> vector<8x128xf32>
    %c1_10 = arith.constant 1 : index
    %c0_11 = arith.constant 0 : index
    %14 = vector.load %arg2[%c1_10, %c0_11] : memref<7x128xf32, #tpu.memory_space<vmem>>, vector<1x128xf32>
    %15 = vector.broadcast %14 : vector<1x128xf32> to vector<8x128xf32>
    %16 = arith.addf %13, %15 : vector<8x128xf32>
    %cst_12 = arith.constant 0.000000e+00 : f32
    %17 = vector.broadcast %cst_12 : f32 to vector<8x128xf32>
    %18 = arith.maximumf %16, %17 : vector<8x128xf32>
    %19 = arith.truncf %0 : vector<8x128xf32> to vector<8x128xbf16>
    %c2 = arith.constant 2 : index
    %c0_13 = arith.constant 0 : index
    %c0_14 = arith.constant 0 : index
    %20 = vector.load %arg1[%c2, %c0_13, %c0_14] : memref<7x128x128xbf16, #tpu.memory_space<vmem>>, vector<1x128x128xbf16>
    %21 = vector.shape_cast %20 : vector<1x128x128xbf16> to vector<128x128xbf16>
    %cst_15 = arith.constant dense<0.000000e+00> : vector<8x128xf32>
    %22 = tpu.matmul %19, %21, %cst_15 {dimension_numbers = #tpu.dot_dimension_numbers<[1], [0], [0], [1], [0, 0, 1, 1], [], []>} : vector<8x128xbf16>, vector<128x128xbf16>, vector<8x128xf32> -> vector<8x128xf32>
    %c2_16 = arith.constant 2 : index
    %c0_17 = arith.constant 0 : index
    %23 = vector.load %arg2[%c2_16, %c0_17] : memref<7x128xf32, #tpu.memory_space<vmem>>, vector<1x128xf32>
    %24 = vector.broadcast %23 : vector<1x128xf32> to vector<8x128xf32>
    %25 = arith.addf %22, %24 : vector<8x128xf32>
    %26 = arith.addf %18, %25 : vector<8x128xf32>
    %cst_18 = arith.constant 0.000000e+00 : f32
    %27 = vector.broadcast %cst_18 : f32 to vector<8x128xf32>
    %28 = arith.maximumf %26, %27 : vector<8x128xf32>
    %29 = arith.truncf %28 : vector<8x128xf32> to vector<8x128xbf16>
    %c3 = arith.constant 3 : index
    %c0_19 = arith.constant 0 : index
    %c0_20 = arith.constant 0 : index
    %30 = vector.load %arg1[%c3, %c0_19, %c0_20] : memref<7x128x128xbf16, #tpu.memory_space<vmem>>, vector<1x128x128xbf16>
    %31 = vector.shape_cast %30 : vector<1x128x128xbf16> to vector<128x128xbf16>
    %cst_21 = arith.constant dense<0.000000e+00> : vector<8x128xf32>
    %32 = tpu.matmul %29, %31, %cst_21 {dimension_numbers = #tpu.dot_dimension_numbers<[1], [0], [0], [1], [0, 0, 1, 1], [], []>} : vector<8x128xbf16>, vector<128x128xbf16>, vector<8x128xf32> -> vector<8x128xf32>
    %c3_22 = arith.constant 3 : index
    %c0_23 = arith.constant 0 : index
    %33 = vector.load %arg2[%c3_22, %c0_23] : memref<7x128xf32, #tpu.memory_space<vmem>>, vector<1x128xf32>
    %34 = vector.broadcast %33 : vector<1x128xf32> to vector<8x128xf32>
    %35 = arith.addf %32, %34 : vector<8x128xf32>
    %cst_24 = arith.constant 0.000000e+00 : f32
    %36 = vector.broadcast %cst_24 : f32 to vector<8x128xf32>
    %37 = arith.maximumf %35, %36 : vector<8x128xf32>
    %38 = arith.truncf %37 : vector<8x128xf32> to vector<8x128xbf16>
    %c4 = arith.constant 4 : index
    %c0_25 = arith.constant 0 : index
    %c0_26 = arith.constant 0 : index
    %39 = vector.load %arg1[%c4, %c0_25, %c0_26] : memref<7x128x128xbf16, #tpu.memory_space<vmem>>, vector<1x128x128xbf16>
    %40 = vector.shape_cast %39 : vector<1x128x128xbf16> to vector<128x128xbf16>
    %cst_27 = arith.constant dense<0.000000e+00> : vector<8x128xf32>
    %41 = tpu.matmul %38, %40, %cst_27 {dimension_numbers = #tpu.dot_dimension_numbers<[1], [0], [0], [1], [0, 0, 1, 1], [], []>} : vector<8x128xbf16>, vector<128x128xbf16>, vector<8x128xf32> -> vector<8x128xf32>
    %c4_28 = arith.constant 4 : index
    %c0_29 = arith.constant 0 : index
    %42 = vector.load %arg2[%c4_28, %c0_29] : memref<7x128xf32, #tpu.memory_space<vmem>>, vector<1x128xf32>
    %43 = vector.broadcast %42 : vector<1x128xf32> to vector<8x128xf32>
    %44 = arith.addf %41, %43 : vector<8x128xf32>
    %cst_30 = arith.constant 0.000000e+00 : f32
    %45 = vector.broadcast %cst_30 : f32 to vector<8x128xf32>
    %46 = arith.maximumf %44, %45 : vector<8x128xf32>
    %47 = arith.addf %46, %28 : vector<8x128xf32>
    %cst_31 = arith.constant 0.000000e+00 : f32
    %48 = vector.broadcast %cst_31 : f32 to vector<8x128xf32>
    %49 = arith.maximumf %47, %48 : vector<8x128xf32>
    %50 = arith.truncf %49 : vector<8x128xf32> to vector<8x128xbf16>
    %c5 = arith.constant 5 : index
    %c0_32 = arith.constant 0 : index
    %c0_33 = arith.constant 0 : index
    %51 = vector.load %arg1[%c5, %c0_32, %c0_33] : memref<7x128x128xbf16, #tpu.memory_space<vmem>>, vector<1x128x128xbf16>
    %52 = vector.shape_cast %51 : vector<1x128x128xbf16> to vector<128x128xbf16>
    %cst_34 = arith.constant dense<0.000000e+00> : vector<8x128xf32>
    %53 = tpu.matmul %50, %52, %cst_34 {dimension_numbers = #tpu.dot_dimension_numbers<[1], [0], [0], [1], [0, 0, 1, 1], [], []>} : vector<8x128xbf16>, vector<128x128xbf16>, vector<8x128xf32> -> vector<8x128xf32>
    %c5_35 = arith.constant 5 : index
    %c0_36 = arith.constant 0 : index
    %54 = vector.load %arg2[%c5_35, %c0_36] : memref<7x128xf32, #tpu.memory_space<vmem>>, vector<1x128xf32>
    %55 = vector.broadcast %54 : vector<1x128xf32> to vector<8x128xf32>
    %56 = arith.addf %53, %55 : vector<8x128xf32>
    %cst_37 = arith.constant 0.000000e+00 : f32
    %57 = vector.broadcast %cst_37 : f32 to vector<8x128xf32>
    %58 = arith.maximumf %56, %57 : vector<8x128xf32>
    %59 = arith.truncf %58 : vector<8x128xf32> to vector<8x128xbf16>
    %c6 = arith.constant 6 : index
    %c0_38 = arith.constant 0 : index
    %c0_39 = arith.constant 0 : index
    %60 = vector.load %arg1[%c6, %c0_38, %c0_39] : memref<7x128x128xbf16, #tpu.memory_space<vmem>>, vector<1x128x128xbf16>
    %61 = vector.shape_cast %60 : vector<1x128x128xbf16> to vector<128x128xbf16>
    %cst_40 = arith.constant dense<0.000000e+00> : vector<8x128xf32>
    %62 = tpu.matmul %59, %61, %cst_40 {dimension_numbers = #tpu.dot_dimension_numbers<[1], [0], [0], [1], [0, 0, 1, 1], [], []>} : vector<8x128xbf16>, vector<128x128xbf16>, vector<8x128xf32> -> vector<8x128xf32>
    %c6_41 = arith.constant 6 : index
    %c0_42 = arith.constant 0 : index
    %63 = vector.load %arg2[%c6_41, %c0_42] : memref<7x128xf32, #tpu.memory_space<vmem>>, vector<1x128xf32>
    %64 = vector.broadcast %63 : vector<1x128xf32> to vector<8x128xf32>
    %65 = arith.addf %62, %64 : vector<8x128xf32>
    %c0_43 = arith.constant 0 : index
    %c0_44 = arith.constant 0 : index
    %66 = vector.load %arg3[%c0_43, %c0_44] : memref<8x128xf32, #tpu.memory_space<vmem>>, vector<8x128xf32>
    tpu.vector_store %arg3[%c0_43, %c0_44], %65 {strides = array<i32>} : memref<8x128xf32, #tpu.memory_space<vmem>>, vector<8x128xf32>,
    return
  }
}

</mosaic_0001>

<bundles_post_ra>
// kernel: _lambda_.1
= control target key start
LH: loop header
LB: loop body
LE: loop exit
PB: predicated region body
PF: predicated region fallthrough
CT: control target
= control target key end

     0   :  { %8 = vsyncpa [#allocation3], 0  ;;  %s1169_s12 = smov [#allocation2]   ;;  %s1299_s0 = inlined_call_operand.vmem [shape: f32[8,128], index: 0, kind: input, shape index: {}]   ;;  %s1300_s1 = inlined_call_operand.hbm [shape: bf16[7,128,128], index: 1, kind: input, shape index: {}]   ;;  %s1301_s2 = inlined_call_operand.vmem [shape: f32[7,128], index: 2, kind: input, shape index: {}]   ;;  %s1302_s3 = inlined_call_operand.vmem [shape: f32[8,128], index: 3, kind: output, shape index: {}]  }
   0x1   :  { %s16_s13 = sshll.u32 %s1169_s12, 4  ;;  %s17_s13 = int_to_ptr.vmem [resolvable:$true] %s16_s13 }
   0x2   :  { %s1155_s14 = scalar_lea.vmem %s17_s13, 7168  ;;  %p1160_p1 = scmp.lt.s32.totalorder %s17_s13, %s17_s13 }
   0x3   :  { %p1156_p0 = scmp.ne.s32.totalorder %s17_s13, %s1155_s14  ;;  %p1161_p2 = scmp.lt.s32.totalorder %s1155_s14, %s1155_s14 }
   0x5   :  { %p1162_p3 = por %p1161_p2, %p1160_p1 }
   0x7   :  { %p1163_p4 = pnand %p1162_p3, %p1156_p0 }
   0x9   :  { %1166 = shalt.err (!%p1163_p4)
}
   0xa   :  { %s1170_s15 = smov 64   ;;  %s1171_s16 = smov 4  }
   0xb   :  { %22 = dma.hbm_to_vmem [thread:$0]  %s1300_s1, 7168, %s17_s13, [#allocation3], %s1170_s15, %s1170_s15, %s1171_s16  }
   0xc   :  { %1167 = dma.done.wait [#allocation3], 7168  }
   0xd   :  { %1168 = vsyncadd [#allocation3], 4294960128  ;;  %v1172_v0 = vmov 0.0   ;;  %vm1173_vm0 = vmmov 0   ;;  %v1091_v1 = vld [vmem:[#allocation2 + $0x38] sm:$0xff]   ;;  %v1092_v2 = vld [vmem:[#allocation2 + $0x30] sm:$0xff]  }
   0xe   :  { %946 = vmatprep.subr.bf16.mxu0 %v1172_v0  ;;  %962 = vmatprep.mubr.msk.bf16.mxu0 %vm1173_vm0, %v1172_v0  ;;  %v1093_v3 = vld [vmem:[#allocation2 + $0x28] sm:$0xff]   ;;  %v1094_v4 = vld [vmem:[#allocation2 + $0x20] sm:$0xff]   ;;  %v1100_v5 = vld [vmem:[#allocation2 + $0x78] sm:$0xff]  }
   0xf   :  { %966 = vmatprep.subr.bf16.mxu1 %v1172_v0  ;;  %982 = vmatprep.mubr.msk.bf16.mxu1 %vm1173_vm0, %v1172_v0  ;;  %v1102_v6 = vld [vmem:[#allocation2 + $0x70] sm:$0xff]   ;;  %v1095_v7 = vld [vmem:[#allocation2 + $0x18] sm:$0xff]   ;;  %v1104_v8 = vld [vmem:[#allocation2 + $0x68] sm:$0xff]  }
  0x10   :  { %947 = vmatpush3.bf16.msra.mxu0 %v1091_v1  ;;  %967 = vmatpush3.bf16.msra.mxu1 %v1100_v5  ;;  %v1096_v9 = vld [vmem:[#allocation2 + $0x10] sm:$0xff]   ;;  %v1106_v10 = vld [vmem:[#allocation2 + $0x60] sm:$0xff]   ;;  %v1097_v11 = vld [vmem:[#allocation2 + $0x8] sm:$0xff]  }
  0x11   :  { %948 = vmatprep.subr.bf16.mxu0 %v1172_v0  ;;  %968 = vmatprep.subr.bf16.mxu1 %v1172_v0  ;;  %v1108_v12 = vld [vmem:[#allocation2 + $0x58] sm:$0xff]   ;;  %v1098_v13 = vld [vmem:[#allocation2] sm:$0xff]   ;;  %v1110_v15 = vld [vmem:[#allocation2 + $0x50] sm:$0xff]  }
  0x12   :  { %v29_v14 = vld [vmem:[%s1299_s0] sm:$0xff]  ;;  %v1099_v16 = vld [vmem:[#allocation2 + $0xb8] sm:$0xff]   ;;  %v1101_v18 = vld [vmem:[#allocation2 + $0xb0] sm:$0xff]  }
  0x13   :  { %v30_v17 = vpack.c.bf16 %v29_v14, %v29_v14  ;;  %v1103_v19 = vld [vmem:[#allocation2 + $0xa8] sm:$0xff]   ;;  %v1105_v20 = vld [vmem:[#allocation2 + $0xa0] sm:$0xff]   ;;  %v1107_v21 = vld [vmem:[#allocation2 + $0x98] sm:$0xff]  }
  0x14   :  { %949 = vmatpush3.bf16.msra.mxu0 %v1092_v2  ;;  %969 = vmatpush3.bf16.msra.mxu1 %v1102_v6  ;;  %v1109_v22 = vld [vmem:[#allocation2 + $0x90] sm:$0xff]   ;;  %v1111_v23 = vld [vmem:[#allocation2 + $0x88] sm:$0xff]   ;;  %v1113_v25 = vld [vmem:[#allocation2 + $0x80] sm:$0xff]  }
  0x15   :  { %950 = vmatprep.subr.bf16.mxu0 %v1172_v0  ;;  %970 = vmatprep.subr.bf16.mxu1 %v1172_v0  ;;  %v1112_v24 = vld [vmem:[#allocation2 + $0x48] sm:$0xff]   ;;  %v1114_v26 = vld [vmem:[#allocation2 + $0x40] sm:$0xff]   ;;  %v1115_v33 = vld [vmem:[#allocation2 + $0xf8] sm:$0xff]  }
  0x16   :  { %v820_v27 = vld [vmem:[%s1301_s2] ss:$0 sm:$0xff]  ;;  %v1116_v36 = vld [vmem:[#allocation2 + $0xf0] sm:$0xff]   ;;  %v1117_v37 = vld [vmem:[#allocation2 + $0xe8] sm:$0xff]  }
  0x17   :  { %v1118_v38 = vld [vmem:[#allocation2 + $0xe0] sm:$0xff]   ;;  %v1119_v39 = vld [vmem:[#allocation2 + $0xd8] sm:$0xff]   ;;  %v1120_v42 = vld [vmem:[#allocation2 + $0xd0] sm:$0xff]  }
  0x18   :  { %951 = vmatpush3.bf16.msra.mxu0 %v1093_v3  ;;  %971 = vmatpush3.bf16.msra.mxu1 %v1104_v8  ;;  %v1121_v45 = vld [vmem:[#allocation2 + $0xc8] sm:$0xff]   ;;  %v1122_v46 = vld [vmem:[#allocation2 + $0xc0] sm:$0xff]   ;;  %v1123_v47 = vld [vmem:[#allocation2 + $0x138] sm:$0xff]  }
  0x19   :  { %952 = vmatprep.subr.bf16.mxu0 %v1172_v0  ;;  %972 = vmatprep.subr.bf16.mxu1 %v1172_v0  ;;  %v1124_v48 = vld [vmem:[#allocation2 + $0x130] sm:$0xff]   ;;  %v1125_v49 = vld [vmem:[#allocation2 + $0x128] sm:$0xff]   ;;  %v1126_v50 = vld [vmem:[#allocation2 + $0x120] sm:$0xff]  }
  0x1a   :  { %v1127_v51 = vld [vmem:[#allocation2 + $0x118] sm:$0xff]   ;;  %v1128_v52 = vld [vmem:[#allocation2 + $0x110] sm:$0xff]   ;;  %v838_v53 = vld [vmem:[%s1301_s2 + $0x2] ss:$0 sm:$0xff] }
  0x1b   :  { %v829_v54 = vld [vmem:[%s1301_s2 + $0x1] ss:$0 sm:$0xff]  ;;  %v1129_v2 = vld [vmem:[#allocation2 + $0x108] sm:$0xff]   ;;  %v1132_v5 = vld [vmem:[#allocation2 + $0x170] sm:$0xff]  }
  0x1c   :  { %953 = vmatpush3.bf16.msra.mxu0 %v1094_v4  ;;  %973 = vmatpush3.bf16.msra.mxu1 %v1106_v10  ;;  %v1130_v3 = vld [vmem:[#allocation2 + $0x100] sm:$0xff]   ;;  %v1131_v4 = vld [vmem:[#allocation2 + $0x178] sm:$0xff]   ;;  %v1133_v6 = vld [vmem:[#allocation2 + $0x168] sm:$0xff]  }
  0x1d   :  { %954 = vmatprep.subr.bf16.mxu0 %v1172_v0  ;;  %974 = vmatprep.subr.bf16.mxu1 %v1172_v0  ;;  %v1135_v8 = vld [vmem:[#allocation2 + $0x158] sm:$0xff]  }
  0x20   :  { %955 = vmatpush3.bf16.msra.mxu0 %v1095_v7  ;;  %975 = vmatpush3.bf16.msra.mxu1 %v1108_v12  ;;  %v1134_v7 = vld [vmem:[#allocation2 + $0x160] sm:$0xff]  }
  0x21   :  { %956 = vmatprep.subr.bf16.mxu0 %v1172_v0  ;;  %976 = vmatprep.subr.bf16.mxu1 %v1172_v0 }
  0x24   :  { %957 = vmatpush3.bf16.msra.mxu0 %v1096_v9  ;;  %977 = vmatpush3.bf16.msra.mxu1 %v1110_v15  ;;  %v847_v9 = vld [vmem:[%s1301_s2 + $0x3] ss:$0 sm:$0xff] }
  0x25   :  { %958 = vmatprep.subr.bf16.mxu0 %v1172_v0  ;;  %978 = vmatprep.subr.bf16.mxu1 %v1172_v0 }
  0x28   :  { %959 = vmatpush3.bf16.msra.mxu0 %v1097_v11  ;;  %979 = vmatpush3.bf16.msra.mxu1 %v1112_v24  ;;  %v1143_v24 = vld [vmem:[#allocation2 + $0x198] sm:$0xff]  }
  0x29   :  { %960 = vmatprep.subr.bf16.mxu0 %v1172_v0  ;;  %980 = vmatprep.subr.bf16.mxu1 %v1172_v0 }
  0x2c   :  { %961 = vmatpush3.bf16.msra.mxu0 %v1098_v13  ;;  %981 = vmatpush3.bf16.msra.mxu1 %v1114_v26  ;;  %v856_v26 = vld [vmem:[%s1301_s2 + $0x4] ss:$0 sm:$0xff] }
  0x2d   :  { %986 = vmatprep.subr.bf16.mxu0 %v1172_v0  ;;  %1006 = vmatprep.subr.bf16.mxu1 %v1172_v0 }
  0x2f   :  { %963 = vmatmul.mubr.bf16.vlgmr.msra.gmra.mxu0 %v30_v17 }
  0x30   :  { %987 = vmatpush3.bf16.msra.mxu0 %v1099_v16  ;;  %1002 = vmatprep.mubr.msk.bf16.mxu0 %vm1173_vm0, %v1172_v0 }
  0x31   :  { %988 = vmatprep.subr.bf16.mxu0 %v1172_v0 }
  0x34   :  { %989 = vmatpush3.bf16.msra.mxu0 %v1101_v18  ;;  %v1137_v18 = vld [vmem:[#allocation2 + $0x148] sm:$0xff]  }
  0x35   :  { %990 = vmatprep.subr.bf16.mxu0 %v1172_v0 }
  0x38   :  { %991 = vmatpush3.bf16.msra.mxu0 %v1103_v19  ;;  %v1138_v19 = vld [vmem:[#allocation2 + $0x140] sm:$0xff]  }
  0x39   :  { %992 = vmatprep.subr.bf16.mxu0 %v1172_v0 }
  0x3c   :  { %993 = vmatpush3.bf16.msra.mxu0 %v1105_v20  ;;  %v1139_v20 = vld [vmem:[#allocation2 + $0x1b8] sm:$0xff]  }
  0x3d   :  { %994 = vmatprep.subr.bf16.mxu0 %v1172_v0 }
  0x40   :  { %995 = vmatpush3.bf16.msra.mxu0 %v1107_v21  ;;  %v1140_v21 = vld [vmem:[#allocation2 + $0x1b0] sm:$0xff]  }
  0x41   :  { %996 = vmatprep.subr.bf16.mxu0 %v1172_v0 }
  0x44   :  { %997 = vmatpush3.bf16.msra.mxu0 %v1109_v22  ;;  %v1141_v22 = vld [vmem:[#allocation2 + $0x1a8] sm:$0xff]  }
  0x45   :  { %998 = vmatprep.subr.bf16.mxu0 %v1172_v0 }
  0x48   :  { %999 = vmatpush3.bf16.msra.mxu0 %v1111_v23  ;;  %v1142_v23 = vld [vmem:[#allocation2 + $0x1a0] sm:$0xff]  }
  0x49   :  { %1000 = vmatprep.subr.bf16.mxu0 %v1172_v0 }
  0x4c   :  { %1001 = vmatpush3.bf16.msra.mxu0 %v1113_v25  ;;  %v1144_v25 = vld [vmem:[#allocation2 + $0x190] sm:$0xff]  }
  0x4d   :  { %1026 = vmatprep.subr.bf16.mxu0 %v1172_v0 }
  0x4f   :  { %1003 = vmatmul.mubr.bf16.vlgmr.msra.gmra.mxu0 %v30_v17  ;;  %v1136_v17 = vld [vmem:[#allocation2 + $0x150] sm:$0xff]  }
  0x50   :  { %1042 = vmatprep.mubr.msk.bf16.mxu0 %vm1173_vm0, %v1172_v0  ;;  %1027 = vmatpush3.bf16.msra.mxu0 %v1123_v47 }
  0x51   :  { %1028 = vmatprep.subr.bf16.mxu0 %v1172_v0 }
  0x54   :  { %1029 = vmatpush3.bf16.msra.mxu0 %v1124_v48 }
  0x55   :  { %1030 = vmatprep.subr.bf16.mxu0 %v1172_v0 }
  0x58   :  { %1031 = vmatpush3.bf16.msra.mxu0 %v1125_v49 }
  0x59   :  { %1032 = vmatprep.subr.bf16.mxu0 %v1172_v0 }
  0x5c   :  { %1033 = vmatpush3.bf16.msra.mxu0 %v1126_v50 }
  0x5d   :  { %1034 = vmatprep.subr.bf16.mxu0 %v1172_v0 }
  0x60   :  { %1035 = vmatpush3.bf16.msra.mxu0 %v1127_v51 }
  0x61   :  { %1036 = vmatprep.subr.bf16.mxu0 %v1172_v0 }
  0x64   :  { %1037 = vmatpush3.bf16.msra.mxu0 %v1128_v52 }
  0x65   :  { %1038 = vmatprep.subr.bf16.mxu0 %v1172_v0 }
  0x68   :  { %1039 = vmatpush3.bf16.msra.mxu0 %v1129_v2 }
  0x69   :  { %1040 = vmatprep.subr.bf16.mxu0 %v1172_v0 }
  0x6c   :  { %1041 = vmatpush3.bf16.msra.mxu0 %v1130_v3 }
  0x6d   :  { %1066 = vmatprep.subr.bf16.mxu0 %v1172_v0 }
  0xef   :  { %v134_v28 = vpop.f32.mrf.mxu0 }
  0xf0   :  { %v135_v29 = vadd.f32 %v820_v27, %v134_v28 }
  0xf1   :  { %v964_v30 = vpop.f32.mrf.mxu0 }
  0xf2   :  { %v140_v31 = vmax.f32 %v135_v29, 0.0 }
  0xf3   :  { %v137_v32 = vpop.f32.mrf.mxu0 }
  0xf4   :  { %v141_v34 = vpack.c.bf16 %v140_v31, %v140_v31 }
  0xf5   :  { %v965_v35 = vpop.f32.mrf.mxu0 }
  0xf6   :  { %983 = vmatmul.mubr.bf16.vlgmr.msra.gmra.mxu1 %v141_v34 }
  0xf7   :  { %1007 = vmatpush3.bf16.msra.mxu1 %v1115_v33  ;;  %1022 = vmatprep.mubr.msk.bf16.mxu1 %vm1173_vm0, %v1172_v0 }
  0xf8   :  { %1008 = vmatprep.subr.bf16.mxu1 %v1172_v0 }
  0xfb   :  { %1009 = vmatpush3.bf16.msra.mxu1 %v1116_v36  ;;  %v1145_v36 = vld [vmem:[#allocation2 + $0x188] sm:$0xff]  }
  0xfc   :  { %1010 = vmatprep.subr.bf16.mxu1 %v1172_v0 }
  0xff   :  { %1011 = vmatpush3.bf16.msra.mxu1 %v1117_v37  ;;  %v1146_v37 = vld [vmem:[#allocation2 + $0x180] sm:$0xff]  }
 0x100   :  { %1012 = vmatprep.subr.bf16.mxu1 %v1172_v0 }
 0x103   :  { %1013 = vmatpush3.bf16.msra.mxu1 %v1118_v38  ;;  %v865_v38 = vld [vmem:[%s1301_s2 + $0x5] ss:$0 sm:$0xff] }
 0x104   :  { %1014 = vmatprep.subr.bf16.mxu1 %v1172_v0 }
 0x107   :  { %1015 = vmatpush3.bf16.msra.mxu1 %v1119_v39 }
 0x108   :  { %1016 = vmatprep.subr.bf16.mxu1 %v1172_v0 }
 0x10b   :  { %1017 = vmatpush3.bf16.msra.mxu1 %v1120_v42 }
 0x10c   :  { %1018 = vmatprep.subr.bf16.mxu1 %v1172_v0 }
 0x10f   :  { %v357_v40 = vpop.f32.mrf.mxu0  ;;  %1019 = vmatpush3.bf16.msra.mxu1 %v1121_v45 }
 0x110   :  { %1020 = vmatprep.subr.bf16.mxu1 %v1172_v0  ;;  %v358_v56 = vadd.f32 %v838_v53, %v357_v40 }
 0x111   :  { %v1004_v41 = vpop.f32.mrf.mxu0 }
 0x113   :  { %v360_v43 = vpop.f32.mrf.mxu0  ;;  %1021 = vmatpush3.bf16.msra.mxu1 %v1122_v46  ;;  %v874_v46 = vld [vmem:[%s1301_s2 + $0x6] ss:$0 sm:$0xff] }
 0x114   :  { %1046 = vmatprep.subr.bf16.mxu1 %v1172_v0 }
 0x115   :  { %v1005_v44 = vpop.f32.mrf.mxu0 }
 0x1b6   :  { %v246_v55 = vpop.f32.mrf.mxu1 }
 0x1b7   :  { %v247_v57 = vadd.f32 %v829_v54, %v246_v55 }
 0x1b8   :  { %v984_v58 = vpop.f32.mrf.mxu1 }
 0x1b9   :  { %v252_v59 = vmax.f32 %v247_v57, 0.0 }
 0x1ba   :  { %v249_v60 = vpop.f32.mrf.mxu1 }
 0x1bb   :  { %v363_v61 = vadd.f32 %v358_v56, %v252_v59 }
 0x1bc   :  { %v985_v62 = vpop.f32.mrf.mxu1 }
 0x1bd   :  { %v1259_v63 = vmax.f32 %v363_v61, 0.0 }
 0x1bf   :  { %v365_v1 = vpack.c.bf16 %v1259_v63, %v1259_v63 }
 0x1c1   :  { %1023 = vmatmul.mubr.bf16.vlgmr.msra.gmra.mxu1 %v365_v1 }
 0x1c2   :  { %1062 = vmatprep.mubr.msk.bf16.mxu1 %vm1173_vm0, %v1172_v0  ;;  %1047 = vmatpush3.bf16.msra.mxu1 %v1131_v4 }
 0x1c3   :  { %1048 = vmatprep.subr.bf16.mxu1 %v1172_v0 }
 0x1c6   :  { %1049 = vmatpush3.bf16.msra.mxu1 %v1132_v5 }
 0x1c7   :  { %1050 = vmatprep.subr.bf16.mxu1 %v1172_v0 }
 0x1ca   :  { %1051 = vmatpush3.bf16.msra.mxu1 %v1133_v6 }
 0x1cb   :  { %1052 = vmatprep.subr.bf16.mxu1 %v1172_v0 }
 0x1ce   :  { %1053 = vmatpush3.bf16.msra.mxu1 %v1134_v7 }
 0x1cf   :  { %1054 = vmatprep.subr.bf16.mxu1 %v1172_v0 }
 0x1d2   :  { %1055 = vmatpush3.bf16.msra.mxu1 %v1135_v8 }
 0x1d3   :  { %1056 = vmatprep.subr.bf16.mxu1 %v1172_v0 }
 0x1d6   :  { %1057 = vmatpush3.bf16.msra.mxu1 %v1136_v17 }
 0x1d7   :  { %1058 = vmatprep.subr.bf16.mxu1 %v1172_v0 }
 0x1da   :  { %1059 = vmatpush3.bf16.msra.mxu1 %v1137_v18 }
 0x1db   :  { %1060 = vmatprep.subr.bf16.mxu1 %v1172_v0 }
 0x1de   :  { %1061 = vmatpush3.bf16.msra.mxu1 %v1138_v19 }
 0x281   :  { %v470_v10 = vpop.f32.mrf.mxu1 }
 0x282   :  { %v471_v11 = vadd.f32 %v847_v9, %v470_v10 }
 0x283   :  { %v1024_v12 = vpop.f32.mrf.mxu1 }
 0x284   :  { %v476_v13 = vmax.f32 %v471_v11, 0.0 }
 0x285   :  { %v473_v14 = vpop.f32.mrf.mxu1 }
 0x286   :  { %v477_v15 = vpack.c.bf16 %v476_v13, %v476_v13 }
 0x287   :  { %v1025_v16 = vpop.f32.mrf.mxu1 }
 0x288   :  { %1043 = vmatmul.mubr.bf16.vlgmr.msra.gmra.mxu0 %v477_v15 }
 0x289   :  { %1082 = vmatprep.mubr.msk.bf16.mxu0 %vm1173_vm0, %v1172_v0  ;;  %1067 = vmatpush3.bf16.msra.mxu0 %v1139_v20 }
 0x28a   :  { %1068 = vmatprep.subr.bf16.mxu0 %v1172_v0 }
 0x28d   :  { %1069 = vmatpush3.bf16.msra.mxu0 %v1140_v21 }
 0x28e   :  { %1070 = vmatprep.subr.bf16.mxu0 %v1172_v0 }
 0x291   :  { %1071 = vmatpush3.bf16.msra.mxu0 %v1141_v22 }
 0x292   :  { %1072 = vmatprep.subr.bf16.mxu0 %v1172_v0 }
 0x295   :  { %1073 = vmatpush3.bf16.msra.mxu0 %v1142_v23 }
 0x296   :  { %1074 = vmatprep.subr.bf16.mxu0 %v1172_v0 }
 0x299   :  { %1075 = vmatpush3.bf16.msra.mxu0 %v1143_v24 }
 0x29a   :  { %1076 = vmatprep.subr.bf16.mxu0 %v1172_v0 }
 0x29d   :  { %1077 = vmatpush3.bf16.msra.mxu0 %v1144_v25 }
 0x29e   :  { %1078 = vmatprep.subr.bf16.mxu0 %v1172_v0 }
 0x2a1   :  { %1079 = vmatpush3.bf16.msra.mxu0 %v1145_v36 }
 0x2a2   :  { %1080 = vmatprep.subr.bf16.mxu0 %v1172_v0 }
 0x2a5   :  { %1081 = vmatpush3.bf16.msra.mxu0 %v1146_v37 }
 0x348   :  { %v582_v27 = vpop.f32.mrf.mxu0 }
 0x349   :  { %v583_v28 = vadd.f32 %v856_v26, %v582_v27 }
 0x34a   :  { %v1044_v29 = vpop.f32.mrf.mxu0 }
 0x34b   :  { %v588_v30 = vmax.f32 %v583_v28, 0.0 }
 0x34c   :  { %v585_v31 = vpop.f32.mrf.mxu0 }
 0x34d   :  { %v589_v32 = vadd.f32 %v588_v30, %v1259_v63 }
 0x34e   :  { %v1045_v33 = vpop.f32.mrf.mxu0 }
 0x34f   :  { %v590_v34 = vmax.f32 %v589_v32, 0.0 }
 0x351   :  { %v591_v35 = vpack.c.bf16 %v590_v34, %v590_v34 }
 0x353   :  { %1063 = vmatmul.mubr.bf16.vlgmr.msra.gmra.mxu1 %v591_v35 }
 0x413   :  { %v696_v39 = vpop.f32.mrf.mxu1 }
 0x414   :  { %v697_v40 = vadd.f32 %v865_v38, %v696_v39 }
 0x415   :  { %v1064_v41 = vpop.f32.mrf.mxu1 }
 0x416   :  { %v702_v42 = vmax.f32 %v697_v40, 0.0 }
 0x417   :  { %v699_v43 = vpop.f32.mrf.mxu1 }
 0x418   :  { %v703_v44 = vpack.c.bf16 %v702_v42, %v702_v42 }
 0x419   :  { %v1065_v45 = vpop.f32.mrf.mxu1 }
 0x41a   :  { %1083 = vmatmul.mubr.bf16.vlgmr.msra.gmra.mxu0 %v703_v44 }
 0x4da   :  { %v808_v47 = vpop.f32.mrf.mxu0 }
 0x4db   :  { %v809_v0 = vadd.f32 %v874_v46, %v808_v47 }
 0x4dc   :  { %v1084_v48 = vpop.f32.mrf.mxu0 }
 0x4dd   :  { %814 = vst [vmem:[%s1302_s3] sm:$0xff] %v809_v0 }
 0x4de   :  { %v811_v49 = vpop.f32.mrf.mxu0 }
 0x4e0   :  { %v1085_v50 = vpop.f32.mrf.mxu0 }
 0x4e1   :  { %819 = vsyncpa [#allocation3], 1 }

</bundles_post_ra>
